<compile_context>
chip_gen: v5e
topology: v5e:2x2
jax: 0.10.0
libtpu: 0.0.40
codegen_flags: <defaults>
</compile_context>

<pallas_src>
import functools

import jax
import jax.numpy as jnp
from jax.experimental import pallas as pl
from jax.experimental.pallas import tpu as pltpu


def _time_embed_kernel(params_ref, x_ref, mark_ref, o_ref, *, T, S):
    # Flattened lane-dense layout: lane l = t*S + s.
    # params_ref: (5, T*S) f32, rows = [w00, w01, w10, w11, bias], tiled over T
    # x_ref:      (tb, T*S)  x repeated S times per time step (native dtype)
    # mark_ref:   (tb, T*S)  mark flattened row-major over (T, S) (native dtype)
    # o_ref:      (tb, T*S)
    L = T * S
    p = params_ref[...]
    w00, w01, w10, w11, bias = p[0:1], p[1:2], p[2:3], p[3:4], p[4:5]  # (1, L)

    x = x_ref[...].astype(jnp.float32)      # (tb, L)
    m = mark_ref[...].astype(jnp.float32)   # (tb, L)

    cur = x * w00 + m * w01 + bias          # contribution read at time t
    nxt = x * w10 + m * w11                 # contribution read at time t+1

    # out[:, t*S+s] = cur[:, t*S+s] + nxt[:, min(t+1, T-1)*S + s]
    if T > 1:
        # lane shift by S with the last time row (last S lanes) repeated
        shifted = jnp.concatenate([nxt[:, S:], nxt[:, L - S:]], axis=1)
    else:
        shifted = nxt

    # Single unmasked full-tile store.
    o_ref[...] = (cur + shifted).astype(o_ref.dtype)


def time_custom_embedding2(x, mark, weights, biases, *, tb=None, out_dtype=jnp.float32):
    """x: (B, T, 1), mark: (B, T, S), weights: (S, 4) rows [w00, w01, w10, w11],
    biases: (S,).  Returns (B, T, S) in `out_dtype` (default f32, matching the
    PyTorch module's float output)."""
    B, T, V = x.shape
    assert V == 1, "module forward only valid for V == 1 (d_inp == 1)"
    S = mark.shape[2]
    L = T * S

    # Pre-tiled (5, T*S) lane table: [w00, w01, w10, w11, bias] per channel,
    # repeated over T so lane l = t*S + s picks channel s's parameters.
    wb = jnp.concatenate(
        [jnp.transpose(weights.astype(jnp.float32)),        # (4, S)
         biases.astype(jnp.float32)[None, :]], axis=0)      # (5, S)
    params = jnp.tile(wb, (1, T))                            # (5, L)

    # Zero-copy lane-dense flatten of mark; x expanded to the same lane layout
    # in its native dtype.  (Keeping x at (B, T) and interleaving on-chip would
    # save its HBM bytes, but that reshape does not lower reliably in Mosaic.)
    mark_flat = mark.reshape(B, L)
    x_flat = jnp.repeat(x.reshape(B, T), S, axis=1)          # (B, L)

    if tb is None:
        # mark + x + out tiles, each double-buffered -> ~6 tiles resident.
        # Budget ~4 MiB per tile so the total (~24 MiB) fits the 32 MiB scoped
        # VMEM limit set below on every generation (v7x: 64 MiB physical).
        row_bytes = L * 4
        budget_rows = max(8, ((4 * 1024 * 1024) // row_bytes) // 8 * 8)
        if B <= budget_rows:
            # Whole batch fits: one full-batch block for tiny B, otherwise
            # split into >=2 8-row-aligned steps so both v7x TCs get work.
            tb = B if B < 16 else max(8, ((-(-B // 2)) + 7) // 8 * 8)
        else:
            tb = budget_rows
    grid = (pl.cdiv(B, tb),)

    out_flat = pl.pallas_call(
        functools.partial(_time_embed_kernel, T=T, S=S),
        out_shape=jax.ShapeDtypeStruct((B, L), out_dtype),
        grid=grid,
        in_specs=[
            pl.BlockSpec((5, L), lambda i: (0, 0)),      # resident weight/bias table
            pl.BlockSpec((tb, L), lambda i: (i, 0)),     # x (lane-dense)
            pl.BlockSpec((tb, L), lambda i: (i, 0)),     # mark (lane-dense)
        ],
        out_specs=pl.BlockSpec((tb, L), lambda i: (i, 0)),
        compiler_params=pltpu.CompilerParams(
            dimension_semantics=("parallel",),
            vmem_limit_bytes=32 * 1024 * 1024),
    )(params, x_flat, mark_flat)
    return out_flat.reshape(B, T, S)


def _ref_forward(x, mark, W, b):
    """Pure-JAX reference mirroring the PyTorch forward step by step."""
    S = mark.shape[2]
    outs = []
    for i in range(S):
        stamp = jnp.concatenate([x, mark[:, :, i:i + 1]], axis=2)       # (B, T, 2)
        padded = jnp.concatenate([stamp, stamp[:, -1:, :]], axis=1)     # (B, T+1, 2)
        w = W[i]                                                        # (2, 2)
        o = (w[0, 0] * padded[:, :-1, 0] + w[0, 1] * padded[:, :-1, 1]
             + w[1, 0] * padded[:, 1:, 0] + w[1, 1] * padded[:, 1:, 1]
             + b[i])                                                    # (B, T)
        outs.append(o)
    return jnp.stack(outs, axis=-1)                                     # (B, T, S)


if __name__ == "__main__":
    # Small shapes consistent with the module: d_inp = 1 (== V), stamp_ch = 4.
    B, T, V, S = 2, 8, 1, 4
    key = jax.random.PRNGKey(0)
    kx, km, kw, kb = jax.random.split(key, 4)

    x = jax.random.normal(kx, (B, T, V), dtype=jnp.float32)
    mark = jax.random.normal(km, (B, T, S), dtype=jnp.float32)

    # Deterministic Conv2d(1, 1, kernel_size=2) params for the stamp_ch time layers.
    W = jax.random.uniform(kw, (S, 2, 2), minval=-0.5, maxval=0.5, dtype=jnp.float32)
    b = jax.random.uniform(kb, (S,), minval=-0.5, maxval=0.5, dtype=jnp.float32)
    # conv_month / conv_time / conv_week exist in __init__ but are unused in forward.

    weights_flat = W.reshape(S, 4)  # row i = [w00, w01, w10, w11]

    fwd = jax.jit(time_custom_embedding2)
    out = jax.block_until_ready(fwd(x, mark, weights_flat, b))

    ref = _ref_forward(x, mark, W, b)
    assert out.shape == (B, T, S)
    assert jnp.allclose(out, ref, atol=1e-5, rtol=1e-5), "mismatch vs reference"

    print("KERNEL_OK")
</pallas_src>

<mosaic_0001>
module attributes {stable_mosaic.version = 11 : i64} {
  func.func @_time_embed_kernel(%arg0: i32, %arg1: memref<5x32xf32, #tpu.memory_space<vmem>>, %arg2: memref<2x32xf32, #tpu.memory_space<vmem>>, %arg3: memref<2x32xf32, #tpu.memory_space<vmem>>, %arg4: memref<2x32xf32, #tpu.memory_space<vmem>>) attributes {dimension_semantics = [#tpu.dimension_semantics<parallel>], iteration_bounds = array<i64: 1>, scalar_prefetch = 0 : i64, scratch_operands = 0 : i64, tpu.core_type = #tpu.core_type<tc>, window_params = [{pipeline_mode = #tpu.pipeline_mode<synchronous>, transform_indices = @transform_0, window_bounds = array<i64: 5, 32>}, {transform_indices = @transform_1, window_bounds = array<i64: 2, 32>}, {transform_indices = @transform_2, window_bounds = array<i64: 2, 32>}, {transform_indices = @transform_3, window_bounds = array<i64: 2, 32>}]} {
    %c0 = arith.constant 0 : index
    %c0_0 = arith.constant 0 : index
    %0 = vector.load %arg1[%c0, %c0_0] : memref<5x32xf32, #tpu.memory_space<vmem>>, vector<5x32xf32>
    %1 = vector.extract_strided_slice %0 {offsets = [0, 0], sizes = [1, 32], strides = [1, 1]} : vector<5x32xf32> to vector<1x32xf32>
    %2 = vector.extract_strided_slice %0 {offsets = [1, 0], sizes = [1, 32], strides = [1, 1]} : vector<5x32xf32> to vector<1x32xf32>
    %3 = vector.extract_strided_slice %0 {offsets = [2, 0], sizes = [1, 32], strides = [1, 1]} : vector<5x32xf32> to vector<1x32xf32>
    %4 = vector.extract_strided_slice %0 {offsets = [3, 0], sizes = [1, 32], strides = [1, 1]} : vector<5x32xf32> to vector<1x32xf32>
    %5 = vector.extract_strided_slice %0 {offsets = [4, 0], sizes = [1, 32], strides = [1, 1]} : vector<5x32xf32> to vector<1x32xf32>
    %c0_1 = arith.constant 0 : index
    %c0_2 = arith.constant 0 : index
    %6 = vector.load %arg2[%c0_1, %c0_2] : memref<2x32xf32, #tpu.memory_space<vmem>>, vector<2x32xf32>
    %c0_3 = arith.constant 0 : index
    %c0_4 = arith.constant 0 : index
    %7 = vector.load %arg3[%c0_3, %c0_4] : memref<2x32xf32, #tpu.memory_space<vmem>>, vector<2x32xf32>
    %8 = vector.broadcast %1 : vector<1x32xf32> to vector<2x32xf32>
    %9 = arith.mulf %6, %8 : vector<2x32xf32>
    %10 = vector.broadcast %2 : vector<1x32xf32> to vector<2x32xf32>
    %11 = arith.mulf %7, %10 : vector<2x32xf32>
    %12 = arith.addf %9, %11 : vector<2x32xf32>
    %13 = vector.broadcast %5 : vector<1x32xf32> to vector<2x32xf32>
    %14 = arith.addf %12, %13 : vector<2x32xf32>
    %15 = vector.broadcast %3 : vector<1x32xf32> to vector<2x32xf32>
    %16 = arith.mulf %6, %15 : vector<2x32xf32>
    %17 = vector.broadcast %4 : vector<1x32xf32> to vector<2x32xf32>
    %18 = arith.mulf %7, %17 : vector<2x32xf32>
    %19 = arith.addf %16, %18 : vector<2x32xf32>
    %20 = vector.extract_strided_slice %19 {offsets = [0, 4], sizes = [2, 28], strides = [1, 1]} : vector<2x32xf32> to vector<2x28xf32>
    %21 = vector.extract_strided_slice %19 {offsets = [0, 28], sizes = [2, 4], strides = [1, 1]} : vector<2x32xf32> to vector<2x4xf32>
    %22 = tpu.concatenate %20, %21 in 1 : vector<2x28xf32>, vector<2x4xf32> -> vector<2x32xf32>
    %23 = arith.addf %14, %22 : vector<2x32xf32>
    %c0_5 = arith.constant 0 : index
    %c0_6 = arith.constant 0 : index
    %24 = vector.load %arg4[%c0_5, %c0_6] : memref<2x32xf32, #tpu.memory_space<vmem>>, vector<2x32xf32>
    tpu.vector_store %arg4[%c0_5, %c0_6], %23 {strides = array<i32>} : memref<2x32xf32, #tpu.memory_space<vmem>>, vector<2x32xf32>,
    return
  }
  func.func @transform_0(%arg0: i32) -> (i32, i32) {
    %c0_i32 = arith.constant 0 : i32
    %c0_i32_0 = arith.constant 0 : i32
    %c0_i32_1 = arith.constant 0 : i32
    return %c0_i32, %c0_i32_0 : i32, i32
  }
  func.func @transform_1(%arg0: i32) -> (i32, i32) {
    %c0_i32 = arith.constant 0 : i32
    %c0_i32_0 = arith.constant 0 : i32
    return %arg0, %c0_i32 : i32, i32
  }
  func.func @transform_2(%arg0: i32) -> (i32, i32) {
    %c0_i32 = arith.constant 0 : i32
    %c0_i32_0 = arith.constant 0 : i32
    return %arg0, %c0_i32 : i32, i32
  }
  func.func @transform_3(%arg0: i32) -> (i32, i32) {
    %c0_i32 = arith.constant 0 : i32
    %c0_i32_0 = arith.constant 0 : i32
    return %arg0, %c0_i32 : i32, i32
  }
}

</mosaic_0001>

<bundles_post_ra>
// kernel: tile.9
= control target key start
LH: loop header
LB: loop body
LE: loop exit
PB: predicated region body
PF: predicated region fallthrough
CT: control target
= control target key end

     0   :  { %vm5_vm0 = vcmask 1044484   ;;  %s101_s14 = smov 28   ;;  %s102_s15 = smov 20   ;;  %vm7_vm1 = vcmask 31744   ;;  %vm17_vm2 = vcmask 261344   ;;  %vm27_vm3 = vcmask 228544   ;;  %s198_s0 = inlined_call_operand.vmem [shape: f32[5,8,4], index: 0, kind: input, shape index: {}]   ;;  %s199_s1 = inlined_call_operand.vmem [shape: f32[5,32], index: 1, kind: output, shape index: {}]  }
   0x1   :  { %v80_v0 = vld [vmem:[%s198_s0 + $0x7] ss:$8 sm:$0xf]   ;;  %v84_v3 = vld [vmem:[%s198_s0 + $0x5] ss:$8 sm:$0xf]  }
   0x2   :  { %v81_v1 = vld [vmem:[%s198_s0 + $0x23] sm:$0x10]   ;;  %v85_v4 = vld [vmem:[%s198_s0 + $0x21] sm:$0x10]   ;;  %v83_v7 = vld [vmem:[%s198_s0 + $0x22] sm:$0x10]  }
   0x3   :  { %v14_v2 = vsel %vm5_vm0, %v81_v1, %v80_v0  ;;  %v34_v5 = vsel %vm5_vm0, %v85_v4, %v84_v3  ;;  %v82_v6 = vld [vmem:[%s198_s0 + $0x6] ss:$8 sm:$0xf]   ;;  %v86_v8 = vld [vmem:[%s198_s0 + $0x4] ss:$8 sm:$0xf]  }
   0x4   :  { %15 = vrot.lane.b32.xlu0 %v14_v2, %s101_s14  ;;  %35 = vrot.lane.b32.xlu1 %v34_v5, %s102_s15  ;;  %v87_v9 = vld [vmem:[%s198_s0 + $0x20] sm:$0x10]   ;;  %v88_v10 = vld [vmem:[%s198_s0 + $0x3] ss:$8 sm:$0xf]   ;;  %v24_v13 = vsel %vm5_vm0, %v83_v7, %v82_v6  ;;  %s103_s28 = smov 12  }
   0x5   :  { %v89_v11 = vld [vmem:[%s198_s0 + $0x1f] sm:$0x10]   ;;  %v44_v14 = vsel %vm5_vm0, %v87_v9, %v86_v8  ;;  %v90_v15 = vld [vmem:[%s198_s0 + $0x2] ss:$8 sm:$0xf]   ;;  %s104_s4 = smov 24  }
   0x6   :  { %v54_v12 = vsel %vm5_vm0, %v89_v11, %v88_v10  ;;  %v91_v16 = vld [vmem:[%s198_s0 + $0x1e] sm:$0x10]   ;;  %s105_s5 = smov 16   ;;  %v92_v17 = vld [vmem:[%s198_s0 + $0x1] ss:$8 sm:$0xf]  }
   0x7   :  { %55 = vrot.lane.b32.xlu2 %v54_v12, %s103_s28  ;;  %v93_v18 = vld [vmem:[%s198_s0 + $0x1d] sm:$0x10]   ;;  %v64_v19 = vsel %vm5_vm0, %v91_v16, %v90_v15  ;;  %s106_s10 = smov 8   ;;  %s107_s11 = smov 4   ;;  %v79_v22 = vld [vmem:[%s198_s0 + $0x1c] sm:$0x10]  }
   0x8   :  { %v74_v20 = vsel %vm5_vm0, %v93_v18, %v92_v17  ;;  %v2_v21 = vld [vmem:[%s198_s0] ss:$8 sm:$0xf]   ;;  %vm37_vm4 = vcmask 195744   ;;  %vm47_vm5 = vcmask 162944   ;;  %vm57_vm6 = vcmask 130144  }
   0x9   :  { %v6_v23 = vsel %vm5_vm0, %v79_v22, %v2_v21  ;;  %vm67_vm7 = vcmask 97344   ;;  %vm77_vm8 = vcmask 64544  }
   0xa   :  { %8 = vst.msk [vmem:[%s199_s1] sm:$0x1f] %vm7_vm1, %v6_v23  }
   0xc   :  { %25 = vrot.lane.b32.xlu0 %v24_v13, %s104_s4  ;;  %45 = vrot.lane.b32.xlu1 %v44_v14, %s105_s5 }
   0xf   :  { %65 = vrot.lane.b32.xlu2 %v64_v19, %s106_s10 }
  0x14   :  { %75 = vrot.lane.b32.xlu0 %v74_v20, %s107_s11 }
  0x61   :  { %v56_v24 = vpop.permute.xlu2 %55  }
  0x69   :  { %v66_v25 = vpop.permute.xlu2 %65  }
  0x76   :  { %v16_v26 = vpop.permute.xlu0 %15   ;;  %v36_v27 = vpop.permute.xlu1 %35  }
  0x77   :  { %18 = vst.msk [vmem:[%s199_s1] sm:$0x1f] %vm17_vm2, %v16_v26  }
  0x7e   :  { %v26_v28 = vpop.permute.xlu0 %25   ;;  %v46_v29 = vpop.permute.xlu1 %45  }
  0x7f   :  { %28 = vst.msk [vmem:[%s199_s1] sm:$0x1f] %vm27_vm3, %v26_v28  }
  0x80   :  { %38 = vst.msk [vmem:[%s199_s1] sm:$0x1f] %vm37_vm4, %v36_v27  }
  0x81   :  { %48 = vst.msk [vmem:[%s199_s1] sm:$0x1f] %vm47_vm5, %v46_v29  }
  0x82   :  { %58 = vst.msk [vmem:[%s199_s1] sm:$0x1f] %vm57_vm6, %v56_v24  }
  0x83   :  { %68 = vst.msk [vmem:[%s199_s1] sm:$0x1f] %vm67_vm7, %v66_v25  }
  0x86   :  { %v76_v30 = vpop.permute.xlu0 %75  }
  0x87   :  { %78 = vst.msk [vmem:[%s199_s1] sm:$0x1f] %vm77_vm8, %v76_v30  }

// kernel: time_custom_embedding2.1
= control target key start
LH: loop header
LB: loop body
LE: loop exit
PB: predicated region body
PF: predicated region fallthrough
CT: control target
= control target key end

     0   :  { %vm33_vm0 = vcmask 228352   ;;  %vm36_vm1 = vcmask 254976   ;;  %s76_s0 = inlined_call_operand.vmem [shape: f32[5,32], index: 0, kind: input, shape index: {}]   ;;  %s77_s1 = inlined_call_operand.vmem [shape: f32[2,32], index: 1, kind: input, shape index: {}]   ;;  %s78_s2 = inlined_call_operand.vmem [shape: f32[2,32], index: 2, kind: input, shape index: {}]   ;;  %s79_s3 = inlined_call_operand.vmem [shape: f32[2,32], index: 3, kind: output, shape index: {}]  }
   0x1   :  { %v14_v0 = vld [vmem:[%s76_s0] sm:$0x1f]  ;;  %s43_s0 = smov 124  }
   0x2   :  { %v15_v1 = vld [vmem:[%s77_s1] sm:$0x3]  ;;  %v17_v3 = vperm.slane %v14_v0, 0  ;;  %v19_v4 = vperm.slane %v14_v0, 1  ;;  %v24_v5 = vperm.slane %v14_v0, 2  ;;  %v26_v6 = vperm.slane %v14_v0, 3 }
   0x3   :  { %v16_v2 = vld [vmem:[%s78_s2] sm:$0x3]  ;;  %v22_v7 = vperm.slane %v14_v0, 4 }
   0x4   :  { %v18_v8 = vmul.f32 %v17_v3, %v15_v1  ;;  %v20_v9 = vmul.f32 %v19_v4, %v16_v2  ;;  %v25_v10 = vmul.f32 %v24_v5, %v15_v1  ;;  %v27_v11 = vmul.f32 %v26_v6, %v16_v2 }
   0x6   :  { %v28_v12 = vadd.f32 %v27_v11, %v25_v10  ;;  %v21_v13 = vadd.f32 %v20_v9, %v18_v8 }
   0x8   :  { %30 = vrot.lane.b32.xlu0 %v28_v12, %s43_s0  ;;  %v23_v14 = vadd.f32 %v22_v7, %v21_v13 }
  0x7a   :  { %v31_v15 = vpop.permute.xlu0 %30 }
  0x7b   :  { %v34_v16 = vsel %vm33_vm0, %v31_v15, %v28_v12 }
  0x7c   :  { %v35_v17 = vadd.f32 %v34_v16, %v23_v14 }
  0x7e   :  { %37 = vst.msk [vmem:[%s79_s3] sm:$0x3] %vm36_vm1, %v35_v17 }

</bundles_post_ra>
